<compile_context>
chip_gen: v7x
topology: tpu7x:2x2x1
jax: 0.10.0
libtpu: 0.0.40
codegen_flags: <defaults>
</compile_context>

<pallas_src>
import numpy as np
import jax
import jax.numpy as jnp
from jax import lax
from jax.experimental import pallas as pl
from jax.experimental.pallas import tpu as pltpu


def _round_up(n, m):
    return ((n + m - 1) // m) * m


def _pick_tile(n, candidates):
    """Largest candidate that evenly divides n; fall back to the full dim."""
    for c in candidates:
        if c <= n and n % c == 0:
            return c
    return n


def _pick_tm(T, row_bytes, budget_bytes):
    """Pick a token-tile size TM.

    Prefers (in order): fits the VMEM budget, gives an even number (>=2) of
    token tiles (v7x megacore), gives >=2 tiles, otherwise the largest fit.
    Returns None if even the smallest candidate does not fit the budget.
    """
    cands = [c for c in (2048, 1024, 512, 256, 128, 64, 32, 16, 8)
             if c <= T and T % c == 0]
    if not cands:
        cands = [T]
    cands = [c for c in cands if c * row_bytes <= budget_bytes]
    if not cands:
        return None
    for c in cands:                       # even #tiles >= 2 (v7x megacore)
        n = T // c
        if n >= 2 and n % 2 == 0:
            return c
    for c in cands:                       # >= 2 tiles
        if T // c >= 2:
            return c
    return cands[0]


# ----------------------------------------------------------------------------
# Kernel 1: gate matmul  (T, D) @ (D, Ep) -> (T, Ep), f32 out
# ----------------------------------------------------------------------------
def _gate_matmul_fused_kernel(x_ref, w_ref, out_ref):
    # x tile arrives at its native dtype; cast to bf16 on the VPU right before
    # the MXU dot.  Single K step -> no accumulator needed.
    out_ref[...] = jnp.dot(x_ref[...].astype(jnp.bfloat16), w_ref[...],
                           preferred_element_type=jnp.float32)


def _gate_matmul_ktiled_kernel(x_ref, w_ref, out_ref, acc_ref):
    @pl.when(pl.program_id(1) == 0)
    def _():
        acc_ref[...] = jnp.zeros_like(acc_ref)

    acc_ref[...] += jnp.dot(x_ref[...].astype(jnp.bfloat16), w_ref[...],
                            preferred_element_type=jnp.float32)

    @pl.when(pl.program_id(1) == pl.num_programs(1) - 1)
    def _():
        out_ref[...] = acc_ref[...].astype(out_ref.dtype)


_VMEM_LIMIT = 48 * 1024 * 1024     # explicit scoped VMEM (v5e default is 16 MiB)
_VMEM_BUDGET = 40 * 1024 * 1024    # tile-sizing budget (headroom on v7x 64 MiB)


def gate_logits(x, w):
    """token_expert_sim = x @ w, f32 output of shape (T, E)."""
    T, D = x.shape
    assert w.shape[0] == D
    E = w.shape[1]
    Ep = _round_up(E, 128)                      # lane-dense output columns

    # Weight is tiny: pad + cast once in the wrapper (negligible traffic).
    w_p = jnp.zeros((D, Ep), jnp.bfloat16).at[:, :E].set(w.astype(jnp.bfloat16))

    x_itemsize = jnp.dtype(x.dtype).itemsize
    w_bytes = D * Ep * 2 * 2                    # bf16 w, double-buffer worst case
    row_bytes = (D * x_itemsize + Ep * 4) * 2   # x tile + f32 out, double-buffered
    tm = _pick_tm(T, row_bytes, _VMEM_BUDGET - w_bytes) \
        if w_bytes < _VMEM_BUDGET else None

    if tm is not None:
        # Fast path: full-D x tiles, resident w, no K axis, no accumulator.
        grid = (T // tm,)
        out = pl.pallas_call(
            _gate_matmul_fused_kernel,
            out_shape=jax.ShapeDtypeStruct((T, Ep), jnp.float32),
            grid=grid,
            in_specs=[
                pl.BlockSpec((tm, D), lambda i: (i, 0)),    # x, native dtype
                pl.BlockSpec((D, Ep), lambda i: (0, 0)),    # w, resident
            ],
            out_specs=pl.BlockSpec((tm, Ep), lambda i: (i, 0)),
            compiler_params=pltpu.CompilerParams(
                dimension_semantics=("parallel",),
                vmem_limit_bytes=_VMEM_LIMIT),
        )(x, w_p)
    else:
        # Fallback for very large D: K-tiled reduction with f32 accumulator.
        TM = _pick_tile(T, (512, 256, 128, 64, 32, 16, 8))
        TK = _pick_tile(D, (2048, 1024, 512, 256, 128))
        grid = (T // TM, D // TK)
        out = pl.pallas_call(
            _gate_matmul_ktiled_kernel,
            out_shape=jax.ShapeDtypeStruct((T, Ep), jnp.float32),
            grid=grid,
            in_specs=[
                pl.BlockSpec((TM, TK), lambda i, k: (i, k)),
                pl.BlockSpec((TK, Ep), lambda i, k: (k, 0)),
            ],
            out_specs=pl.BlockSpec((TM, Ep), lambda i, k: (i, 0)),
            scratch_shapes=[pltpu.VMEM((TM, Ep), jnp.float32)],
            compiler_params=pltpu.CompilerParams(
                dimension_semantics=("parallel", "arbitrary"),
                vmem_limit_bytes=_VMEM_LIMIT),
        )(x, w_p)

    return out[:, :E]


# ----------------------------------------------------------------------------
# Pad-token randomization (plain JAX; tiny elementwise + global min/max pass)
#   torch: random_v = rand([pad_num, E]) * (min - max) * 0.1 + min
#          token_expert_sim = masked_scatter(logits, pad_mask, random_v)
# ----------------------------------------------------------------------------
def randomize_pad_rows(logits, pad_mask, key):
    T, E = logits.shape
    mx = jnp.max(logits)
    mn = jnp.min(logits)
    u = jax.random.uniform(key, (T, E), dtype=logits.dtype)
    rnd = u * (mn - mx) * 0.1 + mn            # always <= mn since (mn - mx) <= 0
    return jnp.where(pad_mask.reshape(T, 1), rnd, logits)


# ----------------------------------------------------------------------------
# Kernel 2: projection_from_sort forward (one-hot permutation matrix, bf16)
#   Forward value of hard + soft - stop_grad(soft) == hard, so only the hard
#   one-hot is materialized.  Tiled over lane-dense (TM, TN) output blocks.
# ----------------------------------------------------------------------------
def _hard_projection_kernel(idx_ref, out_ref):
    TM, TN = out_ref.shape
    j = pl.program_id(1)
    col = j * TN + lax.broadcasted_iota(jnp.int32, (TM, TN), 1)
    out_ref[...] = (col == idx_ref[...]).astype(out_ref.dtype)


def projection_from_sort(score_t, top_index, temperature, out_dtype=jnp.bfloat16):
    # score_t / temperature are only needed for the backward (straight-through)
    # path.  TODO(synk): wrap in a custom_vjp to recover the softmax gradient.
    del score_t, temperature
    T = top_index.shape[0]
    TN = _pick_tile(T, (2048, 1024, 512, 256, 128))
    out_itemsize = jnp.dtype(out_dtype).itemsize
    TM = _pick_tm(T, TN * out_itemsize * 2, 16 * 1024 * 1024)
    if TM is None:
        TM = _pick_tile(T, (256, 128, 64, 32, 16, 8))
    idx = top_index.reshape(T, 1).astype(jnp.int32)
    return pl.pallas_call(
        _hard_projection_kernel,
        out_shape=jax.ShapeDtypeStruct((T, T), out_dtype),
        grid=(T // TM, T // TN),
        in_specs=[pl.BlockSpec((TM, 1), lambda i, j: (i, 0))],
        out_specs=pl.BlockSpec((TM, TN), lambda i, j: (i, j)),
        compiler_params=pltpu.CompilerParams(
            dimension_semantics=("parallel", "parallel"),
            vmem_limit_bytes=_VMEM_LIMIT),
    )(idx)


# ----------------------------------------------------------------------------
# Balanced assignment (plain JAX glue, vectorized: E steps, not T*E)
# ----------------------------------------------------------------------------
def balanced_assignment(scores):
    # TODO(synk): fairseq libbase.balanced_assignment (auction solver) has no
    # JAX drop-in; approximated by a balanced column-greedy top-cap assignment
    # (each expert receives exactly T // E tokens).  For large E this serial
    # loop can dominate wall time; revisit with a sort-based formulation.
    T, E = scores.shape
    assert T % E == 0, "balanced_assignment requires num_tokens % num_experts == 0"
    cap = T // E

    def body(e, carry):
        assign, avail = carry
        col = lax.dynamic_index_in_dim(scores, e, axis=1, keepdims=False)
        col = jnp.where(avail, col, -jnp.inf)
        _, idx = lax.top_k(col, cap)
        assign = assign.at[idx].set(e)
        avail = avail.at[idx].set(False)
        return assign, avail

    assign = jnp.full((T,), -1, jnp.int32)
    avail = jnp.ones((T,), jnp.bool_)
    assign, _ = lax.fori_loop(0, E, body, (assign, avail))
    top_index = jnp.argsort(assign, stable=True).astype(jnp.int32)
    return top_index


# ----------------------------------------------------------------------------
# BalanceGate wrapper (training, non-autoregressive, gate_type='softmax')
# ----------------------------------------------------------------------------
class BalanceGate:
    def __init__(self, model_dim, num_experts, temperature=1.0,
                 gate_type="softmax", init_seed=0):
        self.model_dim = model_dim
        self.num_experts = num_experts
        self.temperature = temperature
        self.gate_type = gate_type
        # torch.nn.init.orthogonal_(self.wg.weight, gain=0.1), weight (E, D)
        w = jax.nn.initializers.orthogonal(scale=0.1)(
            jax.random.PRNGKey(init_seed), (num_experts, model_dim), jnp.float32)
        self.w = jnp.asarray(w).T                          # (D, E)

    def forward(self, inputs, pad_mask, rng_key=None):
        if rng_key is None:
            rng_key = jax.random.PRNGKey(0)
        T, _ = inputs.shape
        E = self.num_experts

        logits = gate_logits(inputs, self.w)                        # (T, E) f32
        token_expert_sim = randomize_pad_rows(logits, pad_mask, rng_key)

        top_index = balanced_assignment(token_expert_sim)
        cap = T // E
        input_splits = jnp.full((E,), cap, dtype=jnp.int32)
        # TODO(synk): _AllToAll.apply on input_splits is a distributed exchange;
        # identity on a single device.
        output_splits = input_splits

        if self.gate_type == "softmax":
            soft_assignment = projection_from_sort(
                token_expert_sim.T, top_index, self.temperature)
        else:
            soft_assignment = None
        l_aux = 0.0
        return top_index, soft_assignment, input_splits, output_splits, l_aux, {}


if __name__ == "__main__":
    key = jax.random.PRNGKey(0)
    bsz, seq, model_dim, num_experts = 2, 8, 32, 4
    T = bsz * seq

    kx, kpad = jax.random.split(key)
    x = jax.random.normal(kx, (bsz, seq, model_dim), jnp.float32).reshape(T, model_dim)
    pad_mask = jnp.zeros((T,), jnp.bool_).at[jnp.array([6, 15])].set(True)

    gate = BalanceGate(model_dim, num_experts)
    sort_by_expert, soft_assignment, input_splits, output_splits, l_aux, _ = \
        gate.forward(x, pad_mask, rng_key=kpad)
    jax.block_until_ready((sort_by_expert, soft_assignment,
                           input_splits, output_splits))

    # ---- sanity checks -------------------------------------------------------
    si = np.asarray(sort_by_expert)
    assert sorted(si.tolist()) == list(range(T)), "sort_by_expert not a permutation"
    assert int(np.asarray(input_splits).sum()) == T
    assert np.array_equal(np.asarray(input_splits), np.asarray(output_splits))

    sa = np.asarray(soft_assignment).astype(np.float32)
    assert sa.shape == (T, T)
    assert np.allclose(sa.sum(-1), 1.0, atol=1e-6), "projection rows must sum to 1"
    rows = np.arange(T)
    assert np.allclose(sa[rows, si], 1.0), "one-hot positions wrong"

    # Pallas gate matmul vs plain JAX matmul (bf16 in-kernel cast, f32 accumulate)
    logits = np.asarray(gate_logits(x, gate.w))
    ref = np.asarray(jnp.dot(x, gate.w))
    assert logits.shape == (T, num_experts)
    assert np.allclose(logits, ref, atol=2e-2, rtol=2e-2)

    # Pad-row randomization semantics: pad rows <= global min, others untouched
    rnd_logits = np.asarray(randomize_pad_rows(jnp.asarray(logits), pad_mask, kpad))
    pm = np.asarray(pad_mask)
    assert np.all(rnd_logits[pm] <= logits.min() + 1e-6)
    assert np.allclose(rnd_logits[~pm], logits[~pm])

    print("KERNEL_OK")
</pallas_src>

<mosaic_0001>
module attributes {stable_mosaic.version = 11 : i64} {
  func.func @_gate_matmul_fused_kernel(%arg0: i32, %arg1: memref<8x32xf32, #tpu.memory_space<vmem>>, %arg2: memref<32x128xbf16, #tpu.memory_space<vmem>>, %arg3: memref<8x128xf32, #tpu.memory_space<vmem>>) attributes {dimension_semantics = [#tpu.dimension_semantics<parallel>], iteration_bounds = array<i64: 2>, scalar_prefetch = 0 : i64, scratch_operands = 0 : i64, tpu.core_type = #tpu.core_type<tc>, window_params = [{transform_indices = @transform_0, window_bounds = array<i64: 8, 32>}, {pipeline_mode = #tpu.pipeline_mode<synchronous>, transform_indices = @transform_1, window_bounds = array<i64: 32, 128>}, {transform_indices = @transform_2, window_bounds = array<i64: 8, 128>}]} {
    %c0 = arith.constant 0 : index
    %c0_0 = arith.constant 0 : index
    %0 = vector.load %arg1[%c0, %c0_0] : memref<8x32xf32, #tpu.memory_space<vmem>>, vector<8x32xf32>
    %1 = arith.truncf %0 : vector<8x32xf32> to vector<8x32xbf16>
    %c0_1 = arith.constant 0 : index
    %c0_2 = arith.constant 0 : index
    %2 = vector.load %arg2[%c0_1, %c0_2] : memref<32x128xbf16, #tpu.memory_space<vmem>>, vector<32x128xbf16>
    %cst = arith.constant dense<0.000000e+00> : vector<8x128xf32>
    %3 = tpu.matmul %1, %2, %cst {dimension_numbers = #tpu.dot_dimension_numbers<[1], [0], [0], [1], [0, 0, 1, 1], [], []>} : vector<8x32xbf16>, vector<32x128xbf16>, vector<8x128xf32> -> vector<8x128xf32>
    %c0_3 = arith.constant 0 : index
    %c0_4 = arith.constant 0 : index
    %4 = vector.load %arg3[%c0_3, %c0_4] : memref<8x128xf32, #tpu.memory_space<vmem>>, vector<8x128xf32>
    tpu.vector_store %arg3[%c0_3, %c0_4], %3 {strides = array<i32>} : memref<8x128xf32, #tpu.memory_space<vmem>>, vector<8x128xf32>,
    return
  }
  func.func @transform_0(%arg0: i32) -> (i32, i32) {
    %c0_i32 = arith.constant 0 : i32
    %c0_i32_0 = arith.constant 0 : i32
    return %arg0, %c0_i32 : i32, i32
  }
  func.func @transform_1(%arg0: i32) -> (i32, i32) {
    %c0_i32 = arith.constant 0 : i32
    %c0_i32_0 = arith.constant 0 : i32
    %c0_i32_1 = arith.constant 0 : i32
    return %c0_i32, %c0_i32_0 : i32, i32
  }
  func.func @transform_2(%arg0: i32) -> (i32, i32) {
    %c0_i32 = arith.constant 0 : i32
    %c0_i32_0 = arith.constant 0 : i32
    return %arg0, %c0_i32 : i32, i32
  }
}

</mosaic_0001>

<bundles_post_ra>
// kernel: tpu_custom_call.1
= control target key start
LH: loop header
LB: loop body
LE: loop exit
PB: predicated region body
PF: predicated region fallthrough
CT: control target
= control target key end

     0   :  { %7 = vsyncpa [#allocation3], 0  ;;  %s771_s0 = inlined_call_operand.hbm [shape: f32[16,32], index: 0, kind: input, shape index: {}]   ;;  %s772_s1 = inlined_call_operand.hbm [shape: bf16[32,128], index: 1, kind: input, shape index: {}]   ;;  %s773_s2 = inlined_call_operand.hbm [shape: f32[16,128], index: 2, kind: output, shape index: {}]  }
   0x1   :  { %9 = vsyncpa [#allocation3 + $0x1], 0 }
   0x2   :  { %10 = vsyncpa [#allocation6], 0 }
   0x3   :  { %11 = vsyncpa [#allocation4], 0 }
   0x4   :  { %13 = vsyncpa [#allocation4 + $0x1], 0  ;;  %s575_s9 = smov 0   ;;  %s577_s10 = smov 0  }
   0x5   :  { %s579_s11 = smov 0   ;;  %s581_s12 = smov 0  }
   0x6 LB: > { %s596_s13 = sadd.s32 4294967295, %s551_s12   ;;  %s332_s14 = sadd.s32 4294967294, %s551_s12   ;;  %s551_s12 = sphi %s581_s12, %s793_s12   ;;  %s547_s11 = sphi %s579_s11, %s792_s11   ;;  %s543_s10 = sphi %s577_s10, %s791_s10   ;;  %s539_s9 = sphi %s575_s9, %s790_s9  }
   0x7   : > { %p39_p0 = scmp.ne.s32.totalorder %s543_s10, %s539_s9  ;;  %p774_p1 = scmp.eq.s32.totalorder %s596_s13, 0 }
   0x8   : > { %p90_p3 = scmp.eq.s32.totalorder %s332_s14, 1  ;;  %p333_p5 = scmp.ge.s32.totalorder %s551_s12, 1 }
   0x9   : > { %p605_p4 = por %p774_p1, %p39_p0  ;;  %p97_p7 = scmp.lt.s32.totalorder %s551_s12, 3 }
   0xa   : > { %p610_p6 = por %p90_p3, %p39_p0  ;;  %s553_s18 = smov [#allocation5]  }
   0xb   : > { %s777_s15 = scalar_select %p605_p4, 1, 0 }
   0xc   : > { %s778_s16 = scalar_select %p610_p6, 1, 0 }
   0xd   : > { %p615_p8 = pnand %p333_p5, %p97_p7  ;;  %s109_s19 = sshll.u32 %s553_s18, 4  ;;  %s619_s19 = int_to_ptr.vmem [resolvable:$true] %s109_s19 }
   0xe   : > { %s631_s21 = sadd.s32 1, %s551_s12   ;;  %s26_s22 = sadd.s32 1, %s547_s11 }
   0xf   : > { %s779_s17 = scalar_select %p615_p8, 1, 0 }
  0x10   : > { %p368_p9 = pneg %p615_p8  ;;  %s23_s23 = ssub.s32 %s551_s12, %s631_s21 }
  0x11   : > { %s423_s26 = scalar_lea.hbm %s772_s1, 256 }
  0x12   : > { %p626_p11 = pnand %p368_p9, %p774_p1  ;;  %p424_p12 = scmp.ne.s32.totalorder %s772_s1, %s423_s26 }
  0x13   : > { %p430_p5 = scmp.lt.u32.totalorder %s423_s26, %s772_s1 }
  0x14   : > { %p425_p13 = pneg %p626_p11 }
  0x16   : > { %p426_p0 = pnand %p425_p13, %p424_p12 }
  0x18   : > { %p427_p3 = pneg %p426_p0 }
  0x1a   : > { %p432_p7 = pnand %p430_p5, %p427_p3 }
  0x1c   : > { %435 = shalt.err (!%p432_p7)
}
  0x1d   : > { %s436_s3 = scalar_lea.vmem %s619_s19, 256  ;;  %p444_p2 = scmp.lt.s32.totalorder %s619_s19, %s619_s19 }
  0x1e   : > { %p437_p9 = scmp.ne.s32.totalorder %s619_s19, %s436_s3  ;;  %p445_p6 = scmp.lt.s32.totalorder %s436_s3, %s436_s3 }
  0x20   : > { %p439_p10 = pnand %p437_p9, %p425_p13  ;;  %p446_p4 = por %p445_p6, %p444_p2 }
  0x22   : > { %p440_p1 = pneg %p439_p10 }
  0x24   : > { %p447_p8 = pnand %p446_p4, %p440_p1 }
  0x26   : > { %450 = shalt.err (!%p447_p8)
}
  0x27   : > { %s554_s4 = smov 64   ;;  %s555_s5 = smov 4  }
  0x28   : > { %371 = dma.hbm_to_vmem [thread:$0]  (!%p626_p11), %s772_s1, 256, %s619_s19, [#allocation6], %s554_s4, %s554_s4, %s555_s5  }
  0x29   : > { %p24_p2 = scmp.eq.s32.totalorder %s23_s23, 0  ;;  %p33_p1 = scmp.ne.s32.totalorder %s547_s11, %s543_s10 }
  0x2a   : > { %p34_p4 = scmp.eq.s32.totalorder %s551_s12, 0  ;;  %p381_p6 = scmp.lt.s32.totalorder %s551_s12, 2 }
  0x2b   : > { %s662_s8 = scalar_select %p24_p2, %s547_s11, %s26_s22  }
  0x2c   : > { %p35_p8 = por %p34_p4, %p33_p1  ;;  %p781_p10 = scmp.eq.s32.totalorder %s596_s13, 1 }
  0x2d   : > { %s123_s18 = sand.u32 1, %s547_s11   ;;  %s337_s24 = sshll.u32 %s551_s12, 7 }
  0x2e   : > { %p666_p12 = por %p781_p10, %p33_p1  ;;  %s336_s25 = sshll.u32 %s123_s18, 3 }
  0x2f   : > { %s675_s27 = scalar_lea.hbm %s771_s0, %s337_s24  ;;  %s127_s19 = scalar_lea.vmem [#allocation2], %s336_s25 }
  0x30   : > { %s134_s22 = sshll.u32 %s127_s19, 4  ;;  %p677_p11 = pnand %p381_p6, %p35_p8  ;;  %s681_s22 = int_to_ptr.vmem [resolvable:$true] %s134_s22 }
  0x31   : > { %s124_s28 = scalar_lea.sflag [#allocation3], %s123_s18  ;;  %s451_s29 = scalar_lea.hbm %s675_s27, 128 }
  0x32   : > { %p452_p13 = scmp.ne.s32.totalorder %s675_s27, %s451_s29  ;;  %p453_p0 = pneg %p677_p11 }
  0x33   : > { %s456_s4 = scalar_lea.hbm %s771_s0, 256  ;;  %p457_p7 = scmp.lt.u32.totalorder %s675_s27, %s771_s0 }
  0x34   : > { %p454_p3 = pnand %p453_p0, %p452_p13  ;;  %p458_p9 = scmp.lt.u32.totalorder %s456_s4, %s451_s29 }
  0x35   : > { %p460_p1 = scmp.lt.u32.totalorder %s451_s29, %s675_s27 }
  0x36   : > { %p455_p5 = pneg %p454_p3  ;;  %p459_p2 = por %p458_p9, %p457_p7 }
  0x38   : > { %p461_p4 = por %p460_p1, %p459_p2 }
  0x3a   : > { %p462_p6 = pnand %p461_p4, %p455_p5 }
  0x3c   : > { %465 = shalt.err (!%p462_p6)
}
  0x3d   : > { %s466_s7 = scalar_lea.vmem %s681_s22, 128  ;;  %s556_s18 = smov [#allocation2]  }
  0x3e   : > { %p467_p8 = scmp.ne.s32.totalorder %s681_s22, %s466_s7  ;;  %s471_s24 = sshll.u32 %s556_s18, 4  ;;  %s472_s24 = int_to_ptr.vmem [resolvable:$false] %s471_s24 }
  0x3f   : > { %s473_s25 = scalar_lea.vmem %s472_s24, 256  ;;  %p474_p3 = scmp.lt.s32.totalorder %s681_s22, %s472_s24 }
  0x40   : > { %p469_p10 = pnand %p467_p8, %p453_p0  ;;  %p475_p7 = scmp.lt.s32.totalorder %s473_s25, %s466_s7 }
  0x42   : > { %p470_p13 = pneg %p469_p10  ;;  %p476_p9 = por %p475_p7, %p474_p3 }
  0x44   : > { %p477_p2 = pnand %p476_p9, %p470_p13 }
  0x46   : > { %480 = shalt.err (!%p477_p2)
}
  0x47   : > { %375 = dma.hbm_to_vmem [thread:$0]  (!%p677_p11), %s675_s27, 128, %s681_s22, %s124_s28  }
  0x48   : > { %p784_p5 = scmp.ne.s32.totalorder %s779_s17, 0 }
  0x49   : > { %s711_s20 = sand.u32 (!%p784_p5), 1, %s543_s10   ;;  %p785_p0 = scmp.ne.s32.totalorder (!%p784_p5), %s777_s15, 0 }
  0x4a   : > { %143 = sbr.rel (%p784_p5) target bundleno = 321 (0x141), region = 28  ;;  %s339_s26 = sshll.u32 (!%p784_p5), %s711_s20, 3 }
  0x4b   : > { %s146_s19 = scalar_lea.sflag (!%p784_p5), [#allocation3], %s711_s20  ;;  %s149_s29 = scalar_lea.vmem (!%p784_p5), [#allocation2], %s339_s26 }
  0x51   : > { %526 = dma.done.wait (%p785_p0), %s146_s19, 128  }
  0x52   : > { %528 = vsyncadd (%p785_p0), %s146_s19, 4294967168  ;;  %p786_p1 = scmp.eq.s32.totalorder %s596_s13, 0 }
  0x54   : > { %530 = dma.done.wait (%p786_p1), [#allocation6], 256   ;;  %p787_p11 = pmov %p786_p1 }
  0x55   : > { %v557_v0 = vmov 0.0   ;;  %vm558_vm0 = vmmov 0   ;;  %v421_v1 = vld [vmem:[#allocation5] sm:$0xff]   ;;  %v422_v2 = vld [vmem:[#allocation5 + $0x8] sm:$0xff]   ;;  %v175_v3 = vld [vmem:[%s149_s29] sm:$0xff]  ;;  %vm193_vm1 = vcmask 261120  }
  0x56   : > { %532 = vsyncadd (%p787_p11), [#allocation6], 4294967040  ;;  %352 = vmatprep.subr.bf16.mxu0 %v557_v0  ;;  %356 = vmatprep.mubr.msk.bf16.mxu0 %vm558_vm0, %v557_v0  ;;  %v176_v4 = vpack.c.bf16 %v175_v3, %v175_v3  ;;  %s173_s15 = scalar_lea.vmem [#allocation7], %s339_s26  ;;  %s346_s27 = sshll.u32 %s596_s13, 7 }
  0x57   : > { %353 = vmatpush3.bf16.msra.mxu0 %v421_v1  ;;  %s252_s17 = sshll.u32 %s173_s15, 4  ;;  %s729_s28 = scalar_lea.hbm %s773_s2, %s346_s27  ;;  %s724_s17 = int_to_ptr.vmem [resolvable:$true] %s252_s17 }
  0x58   : > { %354 = vmatprep.subr.bf16.mxu0 %v557_v0  ;;  %s239_s30 = scalar_lea.sflag [#allocation4], %s711_s20  ;;  %s481_s3 = scalar_lea.vmem %s724_s17, 128 }
  0x59   : > { %p482_p4 = scmp.ne.s32.totalorder %s724_s17, %s481_s3  ;;  %s559_s13 = smov [#allocation7]  }
  0x5a   : > { %s485_s4 = sshll.u32 %s559_s13, 4  ;;  %s486_s4 = int_to_ptr.vmem [resolvable:$false] %s485_s4 }
  0x5b   : > { %355 = vmatpush3.bf16.msra.mxu0 %v422_v2  ;;  %p483_p6 = pnand %p482_p4, %p666_p12  ;;  %s487_s5 = scalar_lea.vmem %s486_s4, 256 }
  0x5c   : > { %p488_p10 = scmp.lt.s32.totalorder %s724_s17, %s486_s4  ;;  %p489_p13 = scmp.lt.s32.totalorder %s487_s5, %s481_s3 }
  0x5d   : > { %p484_p8 = pneg %p483_p6 }
  0x5e   : > { %357 = vmatmul.mubr.msk.bf16.vlgmr.msra.gmra.mrb[0].mxu0 %vm193_vm1, %v176_v4  ;;  %p490_p3 = por %p489_p13, %p488_p10 }
  0x60   : > { %p491_p7 = pnand %p490_p3, %p484_p8 }
 0x131   : > { %v231_v5 = vpop.f32.mrb[0].mxu0 }
 0x132   : > { %237 = vst [vmem:[%s173_s15] sm:$0xff] %v231_v5  ;;  %v358_v6 = vpop.f32.mrb[1].mxu0 }
 0x133   : > { %v234_v7 = vpop.f32.mrb[2].mxu0 }
 0x134   : > { %494 = shalt.err (!%p491_p7)
}
 0x135   : > { %s495_s6 = scalar_lea.hbm %s729_s28, 128  ;;  %s499_s24 = scalar_lea.hbm %s773_s2, 256 }
 0x136   : > { %p496_p9 = scmp.ne.s32.totalorder %s729_s28, %s495_s6  ;;  %p500_p0 = scmp.lt.u32.totalorder %s729_s28, %s773_s2 }
 0x137   : > { %p501_p1 = scmp.lt.u32.totalorder %s499_s24, %s495_s6  ;;  %p503_p4 = scmp.lt.u32.totalorder %s495_s6, %s729_s28 }
 0x138   : > { %p497_p2 = pnand %p496_p9, %p666_p12 }
 0x139   : > { %p502_p11 = por %p501_p1, %p500_p0 }
 0x13a   : > { %p498_p5 = pneg %p497_p2 }
 0x13b   : > { %p504_p6 = por %p503_p4, %p502_p11 }
 0x13d   : > { %p505_p8 = pnand %p504_p6, %p498_p5 }
 0x13f   : > { %508 = shalt.err (!%p505_p8)
}
 0x140   : > { %366 = dma.vmem_to_hbm [thread:$0]  (%p666_p12), %s724_s17, 128, %s729_s28, %s239_s30   ;;  %v359_v8 = vpop.f32.mrb[3].mxu0 }
 0x141 PF: > { %s264_s26 = sand.u32 1, %s539_s9   ;;  %p788_p10 = scmp.ne.s32.totalorder %s778_s16, 0 }
 0x142   : > { %p789_p13 = scmp.ge.s32.totalorder %s551_s12, 2  ;;  %s265_s19 = scalar_lea.sflag [#allocation4], %s264_s26 }
 0x144   : > { %p377_p3 = pnand %p789_p13, %p788_p10 }
 0x146   : > { %534 = dma.done.wait (!%p377_p3), %s265_s19, 128  }
 0x147   : > { %536 = vsyncadd (!%p377_p3), %s265_s19, 4294967168  ;;  %p16_p7 = scmp.ge.s32.totalorder %s631_s21, 4   ;;  %s790_s9 = smov %s543_s10 }
 0x148   : > { %s791_s10 = smov %s547_s11  ;;  %s792_s11 = smov %s662_s8 }
 0x149   : > { %s793_s12 = smov %s631_s21  ;;  %18 = sbr.rel (!%p16_p7) target bundleno = 6 (0x6), region = 77 }
 0x150   :  { %270 = vsyncpa [#allocation3], 1 }
 0x151   :  { %272 = vsyncpa [#allocation3 + $0x1], 1 }
 0x152   :  { %273 = vsyncpa [#allocation6], 1 }
 0x153   :  { %274 = vsyncpa [#allocation4], 1 }
 0x154   :  { %276 = vsyncpa [#allocation4 + $0x1], 1 }

</bundles_post_ra>
